<compile_context>
chip_gen: v7x
topology: tpu7x:2x2x1
jax: 0.10.0
libtpu: 0.0.40
codegen_flags: <defaults>
</compile_context>

<pallas_src>
import jax
import jax.numpy as jnp
from jax.experimental import pallas as pl
from jax.experimental.pallas import tpu as pltpu


def _round_up(x, m):
    return ((x + m - 1) // m) * m


# ---------------------------------------------------------------------------
# Per-generation configuration
# ---------------------------------------------------------------------------
def _chip_config():
    """Lane alignment, TM target, VMEM tile budget and vmem limit per TPU gen."""
    kind = ""
    try:
        kind = jax.devices()[0].device_kind.lower()
    except Exception:  # pragma: no cover - defensive; fall through to default
        pass

    if "7x" in kind or "v7" in kind:
        # v7x: 2 TCs/chip, only 64 MiB VMEM per TC -> smaller budget, but the
        # higher HBM BW means TM~512 already hides the weight stream.
        return dict(name="v7x", lane_align=256, tm_target=512,
                    tile_budget=36 << 20, vmem_limit=48 << 20,
                    prefer_two_token_tiles=True)
    if "v6" in kind:
        # v6e: 128 MiB VMEM, 256x256 MXU, needs large TM to amortize weights.
        return dict(name="v6e", lane_align=256, tm_target=512,
                    tile_budget=64 << 20, vmem_limit=96 << 20,
                    prefer_two_token_tiles=False)
    if "v5 lite" in kind or "v5e" in kind or "v5lite" in kind:
        # v5e: 128x128 MXU, TM~256 bf16 already near compute-bound, but the
        # 16 MiB scoped default must be raised.
        return dict(name="v5e", lane_align=128, tm_target=256,
                    tile_budget=48 << 20, vmem_limit=96 << 20,
                    prefer_two_token_tiles=False)
    # Unknown chip: conservative defaults.
    return dict(name="default", lane_align=128, tm_target=256,
                tile_budget=32 << 20, vmem_limit=64 << 20,
                prefer_two_token_tiles=False)


# ---------------------------------------------------------------------------
# Kernel body
# ---------------------------------------------------------------------------
def _ffn_kernel(x_ref, w1_ref, b1_ref, w2_ref, b2_ref, o_ref, acc_ref):
    # x_ref : (TM, E_pad) cd     w1_ref: (E_pad, TF) cd   b1_ref: (1, TF)  f32
    # w2_ref: (TF, E_pad) cd     b2_ref: (1, E_pad)  f32  o_ref : (TM, E_pad)
    # acc_ref: (TM, E_pad) f32 scratch, resident across the F (reduction) axis.
    f = pl.program_id(1)

    @pl.when(f == 0)
    def _init():
        # Fold b2 into the accumulator init: one broadcast per output tile.
        acc_ref[...] = jnp.broadcast_to(
            b2_ref[...].astype(jnp.float32), acc_ref.shape)

    # First matmul tile (MXU) + f32 bias + ReLU (VPU filler under the MXU).
    h = jnp.dot(x_ref[...], w1_ref[...], preferred_element_type=jnp.float32)
    h = jnp.maximum(h + b1_ref[...], 0.0)

    # Partial second matmul, accumulated in f32; h is fed to the MXU in the
    # compute dtype (standard mixed precision).
    acc_ref[...] += jnp.dot(h.astype(w2_ref.dtype), w2_ref[...],
                            preferred_element_type=jnp.float32)

    @pl.when(f == pl.num_programs(1) - 1)
    def _finalize():
        o_ref[...] = acc_ref[...].astype(o_ref.dtype)


# ---------------------------------------------------------------------------
# One-time parameter preparation (padding + dtype cast + TF selection)
# ---------------------------------------------------------------------------
def prepare_ffn_params(w1, b1, w2, b2, *, compute_dtype=jnp.bfloat16,
                       config=None):
    """Pad/cast weights once at setup. w1: (E, F), b1: (F,), w2: (F, E), b2: (E,)."""
    cfg = dict(_chip_config()) if config is None else dict(config)
    compute_dtype = jnp.dtype(compute_dtype)
    itemsize = compute_dtype.itemsize

    E, F = w1.shape
    lane = cfg["lane_align"]
    E_pad = _round_up(E, lane)
    F_lane = _round_up(F, lane)

    # Double-buffered bytes for a TF-wide W1 + W2 slab in the compute dtype.
    def _weight_bytes(tf):
        return 2 * (E_pad * tf + tf * E_pad) * itemsize

    budget = cfg["tile_budget"]
    if _weight_bytes(F_lane) <= budget // 2:
        # Weights fully resident: grid degenerates to (Mtiles, 1), no re-stream.
        TF = F_lane
    else:
        tf = (budget // 2) // (4 * E_pad * itemsize)
        TF = max(lane, (tf // lane) * lane)
        TF = min(TF, F_lane)
    F_pad = _round_up(F, TF)

    # Zero padding is numerically inert: padded weight rows/cols are zero,
    # relu(0) = 0, padded bias entries are zero, padded outputs are sliced off.
    w1_p = jnp.zeros((E_pad, F_pad), compute_dtype).at[:E, :F].set(
        w1.astype(compute_dtype))
    b1_p = jnp.zeros((1, F_pad), jnp.float32).at[0, :F].set(
        b1.astype(jnp.float32))
    w2_p = jnp.zeros((F_pad, E_pad), compute_dtype).at[:F, :E].set(
        w2.astype(compute_dtype))
    b2_p = jnp.zeros((1, E_pad), jnp.float32).at[0, :E].set(
        b2.astype(jnp.float32))

    return dict(w1=w1_p, b1=b1_p, w2=w2_p, b2=b2_p,
                E=E, F=F, E_pad=E_pad, F_pad=F_pad, TF=TF,
                compute_dtype=compute_dtype, cfg=cfg)


# ---------------------------------------------------------------------------
# Forward pass
# ---------------------------------------------------------------------------
def position_wise_feed_forward(x, params, *, out_dtype=None):
    """x: (B, S, E) -> (B, S, E), using parameters from prepare_ffn_params."""
    cfg = params["cfg"]
    cd = params["compute_dtype"]
    E, F = params["E"], params["F"]
    E_pad, F_pad, TF = params["E_pad"], params["F_pad"], params["TF"]

    B, S, _ = x.shape
    M = B * S
    out_dtype = jnp.dtype(out_dtype) if out_dtype is not None else x.dtype

    itemsize = cd.itemsize
    out_item = jnp.dtype(out_dtype).itemsize
    sub = 8 * (4 // itemsize)          # native sublane multiple: f32->8, bf16->16

    # --- TM selection from the VMEM budget -----------------------------------
    # Per-token-row bytes: double-buffered x tile + double-buffered out tile +
    # resident f32 accumulator + compiler-materialized h round-trip
    # (f32 result + compute-dtype cast).
    per_row = (2 * E_pad * itemsize + 2 * E_pad * out_item + 4 * E_pad
               + TF * (4 + itemsize))
    weight_bytes = 2 * (E_pad * TF + TF * E_pad) * itemsize   # double-buffered
    tm_fit = max(sub, (cfg["tile_budget"] - weight_bytes) // per_row)
    TM = min(cfg["tm_target"], int(tm_fit), _round_up(M, sub))
    TM = max(sub, (TM // sub) * sub)

    # v7x: make sure the "parallel" token axis has >=2 tiles so both
    # TensorCores get work (decode-like small-M shapes).
    if cfg.get("prefer_two_token_tiles") and M > sub:
        for _ in range(8):
            if TM <= sub or _round_up(M, TM) // TM >= 2:
                break
            TM = max(sub, _round_up(TM // 2, sub))

    M_pad = _round_up(M, TM)

    # --- pad + cast the activations (per call, unavoidable) ------------------
    x2d = jnp.zeros((M_pad, E_pad), cd).at[:M, :E].set(
        x.reshape(M, E).astype(cd))

    grid = (M_pad // TM, F_pad // TF)   # (token tiles [parallel], F [arbitrary])

    cost = pl.CostEstimate(
        flops=4 * M * E * F,
        transcendentals=0,
        bytes_accessed=(M_pad * E_pad * (itemsize + out_item)
                        + grid[0] * 2 * E_pad * F_pad * itemsize
                        + 4 * (F_pad + E_pad)))

    out2d = pl.pallas_call(
        _ffn_kernel,
        out_shape=jax.ShapeDtypeStruct((M_pad, E_pad), out_dtype),
        grid_spec=pltpu.PrefetchScalarGridSpec(
            num_scalar_prefetch=0,
            grid=grid,
            in_specs=[
                pl.BlockSpec((TM, E_pad), lambda i, f: (i, 0)),   # x tile
                pl.BlockSpec((E_pad, TF), lambda i, f: (0, f)),   # W1 tile
                pl.BlockSpec((1, TF),     lambda i, f: (0, f)),   # b1 tile
                pl.BlockSpec((TF, E_pad), lambda i, f: (f, 0)),   # W2 tile
                pl.BlockSpec((1, E_pad),  lambda i, f: (0, 0)),   # b2 (resident)
            ],
            out_specs=pl.BlockSpec((TM, E_pad), lambda i, f: (i, 0)),
            scratch_shapes=[pltpu.VMEM((TM, E_pad), jnp.float32)],
        ),
        compiler_params=pltpu.CompilerParams(
            dimension_semantics=("parallel", "arbitrary"),
            vmem_limit_bytes=cfg["vmem_limit"]),
        cost_estimate=cost,
    )(x2d, params["w1"], params["b1"], params["w2"], params["b2"])

    return out2d[:M, :E].reshape(B, S, E)


if __name__ == "__main__":
    # Small shapes consistent with the module's forward: (batch, seq, embed_dim)
    batch, seq, embed_dim, inner_dim = 2, 8, 32, 64

    key = jax.random.PRNGKey(0)
    kx, k1, k2, k3, k4 = jax.random.split(key, 5)

    x = jax.random.normal(kx, (batch, seq, embed_dim), dtype=jnp.float32)

    # Deterministic parameter init (matches nn.Linear shapes, stored transposed
    # as (in, out) so the kernel does plain row-major dots).
    bound1 = 1.0 / (embed_dim ** 0.5)
    bound2 = 1.0 / (inner_dim ** 0.5)
    w1 = jax.random.uniform(k1, (embed_dim, inner_dim), jnp.float32, -bound1, bound1)
    b1 = jax.random.uniform(k2, (inner_dim,), jnp.float32, -bound1, bound1)
    w2 = jax.random.uniform(k3, (inner_dim, embed_dim), jnp.float32, -bound2, bound2)
    b2 = jax.random.uniform(k4, (embed_dim,), jnp.float32, -bound2, bound2)

    # Weights are padded / cast to the compute dtype once, at setup time.
    params = prepare_ffn_params(w1, b1, w2, b2, compute_dtype=jnp.bfloat16)

    out = position_wise_feed_forward(x, params)
    out = jax.block_until_ready(out)

    # Sanity check against pure-f32 JAX reference (loose tolerance: the kernel
    # uses bf16 MXU feeds with f32 accumulation — standard mixed precision).
    ref = jnp.maximum(x @ w1 + b1, 0.0) @ w2 + b2
    assert out.shape == (batch, seq, embed_dim)
    assert jnp.allclose(out, ref, atol=3e-2, rtol=3e-2), \
        f"max abs err {jnp.max(jnp.abs(out - ref))}"

    print("KERNEL_OK")
</pallas_src>

<mosaic_0001>
module attributes {stable_mosaic.version = 11 : i64} {
  func.func @_ffn_kernel(%arg0: i32, %arg1: i32, %arg2: memref<16x128xbf16, #tpu.memory_space<vmem>>, %arg3: memref<128x128xbf16, #tpu.memory_space<vmem>>, %arg4: memref<1x128xf32, #tpu.memory_space<vmem>>, %arg5: memref<128x128xbf16, #tpu.memory_space<vmem>>, %arg6: memref<1x128xf32, #tpu.memory_space<vmem>>, %arg7: memref<16x128xf32, #tpu.memory_space<vmem>>, %arg8: memref<16x128xf32, #tpu.memory_space<vmem>>) attributes {dimension_semantics = [#tpu.dimension_semantics<parallel>, #tpu.dimension_semantics<arbitrary>], iteration_bounds = array<i64: 1, 1>, scalar_prefetch = 0 : i64, scratch_operands = 1 : i64, tpu.core_type = #tpu.core_type<tc>, window_params = [{transform_indices = @transform_0, window_bounds = array<i64: 16, 128>}, {transform_indices = @transform_1, window_bounds = array<i64: 128, 128>}, {transform_indices = @transform_2, window_bounds = array<i64: 1, 128>}, {transform_indices = @transform_3, window_bounds = array<i64: 128, 128>}, {pipeline_mode = #tpu.pipeline_mode<synchronous>, transform_indices = @transform_4, window_bounds = array<i64: 1, 128>}, {transform_indices = @transform_5, window_bounds = array<i64: 16, 128>}]} {
    %c0_i32 = arith.constant 0 : i32
    %0 = arith.cmpi eq, %arg1, %c0_i32 : i32
    %1 = arith.extui %0 : i1 to i32
    %c0_i32_0 = arith.constant 0 : i32
    %2 = arith.cmpi ne, %1, %c0_i32_0 : i32
    scf.if %2 {
      %c0_16 = arith.constant 0 : index
      %c0_17 = arith.constant 0 : index
      %20 = vector.load %arg6[%c0_16, %c0_17] : memref<1x128xf32, #tpu.memory_space<vmem>>, vector<1x128xf32>
      %21 = vector.shape_cast %20 : vector<1x128xf32> to vector<1x128xf32>
      %22 = vector.broadcast %21 : vector<1x128xf32> to vector<16x128xf32>
      %c0_18 = arith.constant 0 : index
      %c0_19 = arith.constant 0 : index
      %23 = vector.load %arg8[%c0_18, %c0_19] : memref<16x128xf32, #tpu.memory_space<vmem>>, vector<16x128xf32>
      tpu.vector_store %arg8[%c0_18, %c0_19], %22 {strides = array<i32>} : memref<16x128xf32, #tpu.memory_space<vmem>>, vector<16x128xf32>,
    } else {
    }
    %c0 = arith.constant 0 : index
    %c0_1 = arith.constant 0 : index
    %3 = vector.load %arg2[%c0, %c0_1] : memref<16x128xbf16, #tpu.memory_space<vmem>>, vector<16x128xbf16>
    %c0_2 = arith.constant 0 : index
    %c0_3 = arith.constant 0 : index
    %4 = vector.load %arg3[%c0_2, %c0_3] : memref<128x128xbf16, #tpu.memory_space<vmem>>, vector<128x128xbf16>
    %cst = arith.constant dense<0.000000e+00> : vector<16x128xf32>
    %5 = tpu.matmul %3, %4, %cst {dimension_numbers = #tpu.dot_dimension_numbers<[1], [0], [0], [1], [0, 0, 1, 1], [], []>} : vector<16x128xbf16>, vector<128x128xbf16>, vector<16x128xf32> -> vector<16x128xf32>
    %c0_4 = arith.constant 0 : index
    %c0_5 = arith.constant 0 : index
    %6 = vector.load %arg4[%c0_4, %c0_5] : memref<1x128xf32, #tpu.memory_space<vmem>>, vector<1x128xf32>
    %7 = vector.broadcast %6 : vector<1x128xf32> to vector<16x128xf32>
    %8 = arith.addf %5, %7 : vector<16x128xf32>
    %cst_6 = arith.constant 0.000000e+00 : f32
    %9 = vector.broadcast %cst_6 : f32 to vector<16x128xf32>
    %10 = arith.maximumf %8, %9 : vector<16x128xf32>
    %c0_7 = arith.constant 0 : index
    %c0_8 = arith.constant 0 : index
    %11 = vector.load %arg8[%c0_7, %c0_8] : memref<16x128xf32, #tpu.memory_space<vmem>>, vector<16x128xf32>
    %12 = arith.truncf %10 : vector<16x128xf32> to vector<16x128xbf16>
    %c0_9 = arith.constant 0 : index
    %c0_10 = arith.constant 0 : index
    %13 = vector.load %arg5[%c0_9, %c0_10] : memref<128x128xbf16, #tpu.memory_space<vmem>>, vector<128x128xbf16>
    %cst_11 = arith.constant dense<0.000000e+00> : vector<16x128xf32>
    %14 = tpu.matmul %12, %13, %cst_11 {dimension_numbers = #tpu.dot_dimension_numbers<[1], [0], [0], [1], [0, 0, 1, 1], [], []>} : vector<16x128xbf16>, vector<128x128xbf16>, vector<16x128xf32> -> vector<16x128xf32>
    %15 = arith.addf %11, %14 : vector<16x128xf32>
    %c0_12 = arith.constant 0 : index
    %c0_13 = arith.constant 0 : index
    %16 = vector.load %arg8[%c0_12, %c0_13] : memref<16x128xf32, #tpu.memory_space<vmem>>, vector<16x128xf32>
    tpu.vector_store %arg8[%c0_12, %c0_13], %15 {strides = array<i32>} : memref<16x128xf32, #tpu.memory_space<vmem>>, vector<16x128xf32>,
    %c0_i32_14 = arith.constant 0 : i32
    %17 = arith.cmpi eq, %arg1, %c0_i32_14 : i32
    %18 = arith.extui %17 : i1 to i32
    %c0_i32_15 = arith.constant 0 : i32
    %19 = arith.cmpi ne, %18, %c0_i32_15 : i32
    scf.if %19 {
      %c0_16 = arith.constant 0 : index
      %c0_17 = arith.constant 0 : index
      %20 = vector.load %arg8[%c0_16, %c0_17] : memref<16x128xf32, #tpu.memory_space<vmem>>, vector<16x128xf32>
      %c0_18 = arith.constant 0 : index
      %c0_19 = arith.constant 0 : index
      %21 = vector.load %arg7[%c0_18, %c0_19] : memref<16x128xf32, #tpu.memory_space<vmem>>, vector<16x128xf32>
      tpu.vector_store %arg7[%c0_18, %c0_19], %20 {strides = array<i32>} : memref<16x128xf32, #tpu.memory_space<vmem>>, vector<16x128xf32>,
    } else {
    }
    return
  }
  func.func @transform_0(%arg0: i32, %arg1: i32) -> (i32, i32) {
    %c0_i32 = arith.constant 0 : i32
    %c0_i32_0 = arith.constant 0 : i32
    return %arg0, %c0_i32 : i32, i32
  }
  func.func @transform_1(%arg0: i32, %arg1: i32) -> (i32, i32) {
    %c0_i32 = arith.constant 0 : i32
    %c0_i32_0 = arith.constant 0 : i32
    return %c0_i32, %arg1 : i32, i32
  }
  func.func @transform_2(%arg0: i32, %arg1: i32) -> (i32, i32) {
    %c0_i32 = arith.constant 0 : i32
    %c0_i32_0 = arith.constant 0 : i32
    return %c0_i32, %arg1 : i32, i32
  }
  func.func @transform_3(%arg0: i32, %arg1: i32) -> (i32, i32) {
    %c0_i32 = arith.constant 0 : i32
    %c0_i32_0 = arith.constant 0 : i32
    return %arg1, %c0_i32 : i32, i32
  }
  func.func @transform_4(%arg0: i32, %arg1: i32) -> (i32, i32) {
    %c0_i32 = arith.constant 0 : i32
    %c0_i32_0 = arith.constant 0 : i32
    %c0_i32_1 = arith.constant 0 : i32
    return %c0_i32, %c0_i32_0 : i32, i32
  }
  func.func @transform_5(%arg0: i32, %arg1: i32) -> (i32, i32) {
    %c0_i32 = arith.constant 0 : i32
    %c0_i32_0 = arith.constant 0 : i32
    return %arg0, %c0_i32 : i32, i32
  }
}

</mosaic_0001>

<bundles_post_ra>
// kernel: tpu_custom_call.1
= control target key start
LH: loop header
LB: loop body
LE: loop exit
PB: predicated region body
PF: predicated region fallthrough
CT: control target
= control target key end

     0   :  { %10 = vsyncpa [#allocation4], 0  ;;  %s735_s0 = inlined_call_operand.hbm [shape: bf16[16,128], index: 0, kind: input, shape index: {}]   ;;  %s736_s1 = inlined_call_operand.hbm [shape: bf16[128,128], index: 1, kind: input, shape index: {}]   ;;  %s737_s2 = inlined_call_operand.hbm [shape: f32[1,128], index: 2, kind: input, shape index: {}]   ;;  %s738_s3 = inlined_call_operand.hbm [shape: bf16[128,128], index: 3, kind: input, shape index: {}]   ;;  %s739_s4 = inlined_call_operand.hbm [shape: f32[1,128], index: 4, kind: input, shape index: {}]   ;;  %s740_s5 = inlined_call_operand.hbm [shape: f32[16,128], index: 5, kind: output, shape index: {}]  }
   0x1   :  { %11 = vsyncpa [#allocation7], 0 }
   0x2   :  { %12 = vsyncpa [#allocation10], 0 }
   0x3   :  { %13 = vsyncpa [#allocation5], 0  ;;  %s605_s18 = smov [#allocation6]   ;;  %s606_s20 = smov [#allocation9]  }
   0x4   :  { %s31_s19 = sshll.u32 %s605_s18, 4  ;;  %s53_s21 = sshll.u32 %s606_s20, 4  ;;  %s32_s19 = int_to_ptr.vmem [resolvable:$true] %s31_s19  ;;  %s647_s21 = int_to_ptr.vmem [resolvable:$true] %s53_s21 }
   0x5   :  { %s465_s24 = scalar_lea.hbm %s736_s1, 1024 }
   0x6   :  { %p466_p0 = scmp.ne.s32.totalorder %s736_s1, %s465_s24  ;;  %p469_p1 = scmp.lt.u32.totalorder %s465_s24, %s736_s1 }
   0x8   :  { %p471_p2 = pnand %p469_p1, %p466_p0 }
   0xa   :  { %474 = shalt.err (!%p471_p2)
}
   0xb   :  { %s475_s29 = scalar_lea.vmem %s32_s19, 1024  ;;  %p480_p4 = scmp.lt.s32.totalorder %s32_s19, %s32_s19 }
   0xc   :  { %p476_p3 = scmp.ne.s32.totalorder %s32_s19, %s475_s29  ;;  %p481_p5 = scmp.lt.s32.totalorder %s475_s29, %s475_s29 }
   0xe   :  { %p482_p6 = por %p481_p5, %p480_p4 }
  0x10   :  { %p483_p7 = pnand %p482_p6, %p476_p3 }
  0x12   :  { %486 = shalt.err (!%p483_p7)
}
  0x13   :  { %s607_s30 = smov 64   ;;  %s608_s6 = smov 4  }
  0x14   :  { %37 = dma.hbm_to_vmem [thread:$0]  %s736_s1, 1024, %s32_s19, [#allocation7], %s607_s30, %s607_s30, %s608_s6  }
  0x15   :  { %s487_s11 = scalar_lea.hbm %s738_s3, 1024 }
  0x16   :  { %p488_p8 = scmp.ne.s32.totalorder %s738_s3, %s487_s11  ;;  %p491_p9 = scmp.lt.u32.totalorder %s487_s11, %s738_s3 }
  0x18   :  { %p493_p10 = pnand %p491_p9, %p488_p8 }
  0x1a   :  { %496 = shalt.err (!%p493_p10)
}
  0x1b   :  { %s497_s16 = scalar_lea.vmem %s647_s21, 1024  ;;  %p502_p12 = scmp.lt.s32.totalorder %s647_s21, %s647_s21 }
  0x1c   :  { %p498_p11 = scmp.ne.s32.totalorder %s647_s21, %s497_s16  ;;  %p503_p13 = scmp.lt.s32.totalorder %s497_s16, %s497_s16 }
  0x1e   :  { %p504_p0 = por %p503_p13, %p502_p12 }
  0x20   :  { %p505_p1 = pnand %p504_p0, %p498_p11 }
  0x22   :  { %508 = shalt.err (!%p505_p1)
}
  0x23   :  { %59 = dma.hbm_to_vmem [thread:$0]  %s738_s3, 1024, %s647_s21, [#allocation10], %s607_s30, %s607_s30, %s608_s6  }
  0x24   :  { %s609_s18 = smov [#allocation3]   ;;  %s610_s20 = smov [#allocation8]  }
  0x25   :  { %s19_s19 = sshll.u32 %s609_s18, 4  ;;  %s44_s22 = sshll.u32 %s610_s20, 4  ;;  %s20_s19 = int_to_ptr.vmem [resolvable:$true] %s19_s19  ;;  %s45_s22 = int_to_ptr.vmem [resolvable:$true] %s44_s22 }
  0x26   :  { %s509_s25 = scalar_lea.hbm %s735_s0, 128 }
  0x27   :  { %p510_p2 = scmp.ne.s32.totalorder %s735_s0, %s509_s25  ;;  %p513_p3 = scmp.lt.u32.totalorder %s509_s25, %s735_s0 }
  0x29   :  { %p515_p4 = pnand %p513_p3, %p510_p2 }
  0x2b   :  { %518 = shalt.err (!%p515_p4)
}
  0x2c   :  { %s519_s3 = scalar_lea.vmem %s20_s19, 128  ;;  %p524_p6 = scmp.lt.s32.totalorder %s20_s19, %s20_s19 }
  0x2d   :  { %p520_p5 = scmp.ne.s32.totalorder %s20_s19, %s519_s3  ;;  %p525_p7 = scmp.lt.s32.totalorder %s519_s3, %s519_s3 }
  0x2f   :  { %p526_p8 = por %p525_p7, %p524_p6 }
  0x31   :  { %p527_p9 = pnand %p526_p8, %p520_p5 }
  0x33   :  { %530 = shalt.err (!%p527_p9)
}
  0x34   :  { %25 = dma.hbm_to_vmem [thread:$0]  %s735_s0, 128, %s20_s19, [#allocation4], %s607_s30, %s607_s30, %s608_s6  }
  0x35   :  { %s531_s10 = scalar_lea.hbm %s737_s2, 16 }
  0x36   :  { %p532_p10 = scmp.ne.s32.totalorder %s737_s2, %s531_s10  ;;  %p535_p11 = scmp.lt.u32.totalorder %s531_s10, %s737_s2 }
  0x38   :  { %p537_p12 = pnand %p535_p11, %p532_p10 }
  0x3a   :  { %540 = shalt.err (!%p537_p12)
}
  0x3b   :  { %s541_s15 = scalar_lea.vmem %s45_s22, 16  ;;  %s545_s16 = scalar_lea.vmem %s45_s22, 32 }
  0x3c   :  { %p542_p13 = scmp.ne.s32.totalorder %s45_s22, %s541_s15  ;;  %p546_p0 = scmp.lt.s32.totalorder %s45_s22, %s45_s22 }
  0x3d   :  { %p547_p1 = scmp.lt.s32.totalorder %s545_s16, %s541_s15 }
  0x3f   :  { %p548_p2 = por %p547_p1, %p546_p0 }
  0x41   :  { %p549_p3 = pnand %p548_p2, %p542_p13 }
  0x43   :  { %552 = shalt.err (!%p549_p3)
}
  0x44   :  { %47 = dma.hbm_to_vmem [thread:$0]  %s737_s2, 16, %s45_s22, [#allocation7]  }
  0x45   :  { %s611_s6 = smov [#allocation11]   ;;  %s553_s19 = scalar_lea.hbm %s739_s4, 16 }
  0x46   :  { %s66_s1 = sshll.u32 %s611_s6, 4  ;;  %p554_p4 = scmp.ne.s32.totalorder %s739_s4, %s553_s19  ;;  %s67_s1 = int_to_ptr.vmem [resolvable:$true] %s66_s1 }
  0x47   :  { %p557_p5 = scmp.lt.u32.totalorder %s553_s19, %s739_s4 }
  0x49   :  { %p559_p6 = pnand %p557_p5, %p554_p4 }
  0x4b   :  { %562 = shalt.err (!%p559_p6)
}
  0x4c   :  { %s563_s26 = scalar_lea.vmem %s67_s1, 16  ;;  %s567_s2 = scalar_lea.vmem %s67_s1, 32 }
  0x4d   :  { %p564_p7 = scmp.ne.s32.totalorder %s67_s1, %s563_s26  ;;  %p568_p8 = scmp.lt.s32.totalorder %s67_s1, %s67_s1 }
  0x4e   :  { %p569_p9 = scmp.lt.s32.totalorder %s567_s2, %s563_s26 }
  0x50   :  { %p570_p10 = por %p569_p9, %p568_p8 }
  0x52   :  { %p571_p11 = pnand %p570_p10, %p564_p7 }
  0x54   :  { %574 = shalt.err (!%p571_p11)
}
  0x55   :  { %69 = dma.hbm_to_vmem [thread:$0]  %s739_s4, 16, %s67_s1, [#allocation10]  }
  0x56   :  { %597 = dma.done.wait [#allocation4], 128  }
  0x57   :  { %598 = vsyncadd [#allocation4], 4294967168 }
  0x58   :  { %599 = dma.done.wait [#allocation7], 1040  }
  0x59   :  { %600 = vsyncadd [#allocation7], 4294966256 }
  0x5a   :  { %601 = dma.done.wait [#allocation10], 1040  }
  0x5b   :  { %602 = vsyncadd [#allocation10], 4294966256  ;;  %v612_v0 = vmov 0.0   ;;  %vm613_vm0 = vmmov 0   ;;  %v448_v1 = vld [vmem:[#allocation6] sm:$0xff]   ;;  %v449_v2 = vld [vmem:[#allocation6 + $0x8] sm:$0xff]  }
  0x5c   :  { %396 = vmatprep.subr.bf16.mxu0 %v612_v0  ;;  %412 = vmatprep.mubr.msk.bf16.mxu0 %vm613_vm0, %v612_v0  ;;  %v450_v3 = vld [vmem:[#allocation6 + $0x10] sm:$0xff]   ;;  %v457_v4 = vld [vmem:[#allocation9] sm:$0xff]   ;;  %v451_v5 = vld [vmem:[#allocation6 + $0x18] sm:$0xff]   ;;  %s614_s4 = smov [#allocation12]  }
  0x5d   :  { %416 = vmatprep.subr.bf16.mxu1 %v612_v0  ;;  %432 = vmatprep.mubr.msk.bf16.mxu1 %vm613_vm0, %v612_v0  ;;  %v458_v6 = vld [vmem:[#allocation9 + $0x8] sm:$0xff]   ;;  %v452_v7 = vld [vmem:[#allocation6 + $0x20] sm:$0xff]   ;;  %v459_v8 = vld [vmem:[#allocation9 + $0x10] sm:$0xff]   ;;  %s345_s28 = sshll.u32 %s614_s4, 4  ;;  %s346_s28 = int_to_ptr.vmem [resolvable:$true] %s345_s28 }
  0x5e   :  { %397 = vmatpush3.bf16.msra.mxu0 %v448_v1  ;;  %417 = vmatpush3.bf16.msra.mxu1 %v457_v4  ;;  %v453_v9 = vld [vmem:[#allocation6 + $0x28] sm:$0xff]   ;;  %v460_v10 = vld [vmem:[#allocation9 + $0x18] sm:$0xff]   ;;  %v454_v11 = vld [vmem:[#allocation6 + $0x30] sm:$0xff]   ;;  %s575_s29 = scalar_lea.vmem %s346_s28, 256  ;;  %p580_p13 = scmp.lt.s32.totalorder %s346_s28, %s346_s28 }
  0x5f   :  { %398 = vmatprep.subr.bf16.mxu0 %v612_v0  ;;  %418 = vmatprep.subr.bf16.mxu1 %v612_v0  ;;  %v461_v12 = vld [vmem:[#allocation9 + $0x20] sm:$0xff]   ;;  %v455_v13 = vld [vmem:[#allocation6 + $0x38] sm:$0xff]   ;;  %v462_v14 = vld [vmem:[#allocation9 + $0x28] sm:$0xff]   ;;  %p576_p12 = scmp.ne.s32.totalorder %s346_s28, %s575_s29  ;;  %p581_p0 = scmp.lt.s32.totalorder %s575_s29, %s575_s29 }
  0x60   :  { %v456_v15 = vld [vmem:[#allocation3] sm:$0xff]   ;;  %v360_v18 = vld [vmem:[#allocation8] ss:$0 sm:$0xff]  ;;  %v359_v28 = vld [vmem:[#allocation11] ss:$0 sm:$0xff] }
  0x61   :  { %v463_v16 = vld [vmem:[#allocation9 + $0x30] sm:$0xff]   ;;  %v464_v17 = vld [vmem:[#allocation9 + $0x38] sm:$0xff]   ;;  %p582_p1 = por %p581_p0, %p580_p13 }
  0x62   :  { %399 = vmatpush3.bf16.msra.mxu0 %v449_v2  ;;  %419 = vmatpush3.bf16.msra.mxu1 %v458_v6 }
  0x63   :  { %400 = vmatprep.subr.bf16.mxu0 %v612_v0  ;;  %420 = vmatprep.subr.bf16.mxu1 %v612_v0  ;;  %p583_p2 = pnand %p582_p1, %p576_p12 }
  0x66   :  { %401 = vmatpush3.bf16.msra.mxu0 %v450_v3  ;;  %421 = vmatpush3.bf16.msra.mxu1 %v459_v8 }
  0x67   :  { %402 = vmatprep.subr.bf16.mxu0 %v612_v0  ;;  %422 = vmatprep.subr.bf16.mxu1 %v612_v0 }
  0x6a   :  { %403 = vmatpush3.bf16.msra.mxu0 %v451_v5  ;;  %423 = vmatpush3.bf16.msra.mxu1 %v460_v10 }
  0x6b   :  { %404 = vmatprep.subr.bf16.mxu0 %v612_v0  ;;  %424 = vmatprep.subr.bf16.mxu1 %v612_v0 }
  0x6e   :  { %405 = vmatpush3.bf16.msra.mxu0 %v452_v7  ;;  %425 = vmatpush3.bf16.msra.mxu1 %v461_v12 }
  0x6f   :  { %406 = vmatprep.subr.bf16.mxu0 %v612_v0  ;;  %426 = vmatprep.subr.bf16.mxu1 %v612_v0 }
  0x72   :  { %407 = vmatpush3.bf16.msra.mxu0 %v453_v9  ;;  %427 = vmatpush3.bf16.msra.mxu1 %v462_v14 }
  0x73   :  { %408 = vmatprep.subr.bf16.mxu0 %v612_v0  ;;  %428 = vmatprep.subr.bf16.mxu1 %v612_v0 }
  0x76   :  { %409 = vmatpush3.bf16.msra.mxu0 %v454_v11  ;;  %429 = vmatpush3.bf16.msra.mxu1 %v463_v16 }
  0x77   :  { %410 = vmatprep.subr.bf16.mxu0 %v612_v0  ;;  %430 = vmatprep.subr.bf16.mxu1 %v612_v0 }
  0x7a   :  { %411 = vmatpush3.bf16.msra.mxu0 %v455_v13  ;;  %431 = vmatpush3.bf16.msra.mxu1 %v464_v17 }
  0x7d   :  { %413 = vmatmul.mubr.bf16.vlgmr.msra.gmra.mrb[0].mxu0 %v456_v15 }
 0x150   :  { %v212_v19 = vpop.f32.mrb[0].mxu0 }
 0x151   :  { %v213_v20 = vadd.f32 %v360_v18, %v212_v19  ;;  %v414_v21 = vpop.f32.mrb[1].mxu0 }
 0x152   :  { %v215_v22 = vpop.f32.mrb[2].mxu0 }
 0x153   :  { %v216_v23 = vadd.f32 %v360_v18, %v215_v22  ;;  %v415_v24 = vpop.f32.mrb[3].mxu0  ;;  %v219_v25 = vmax.f32 %v213_v20, 0.0 }
 0x155   :  { %v220_v26 = vmax.f32 %v216_v23, 0.0 }
 0x157   :  { %v223_v27 = vpack.c.bf16 %v220_v26, %v219_v25 }
 0x159   :  { %433 = vmatmul.mubr.bf16.vlgmr.msra.gmra.mrb[0].mxu1 %v223_v27 }
 0x22c   :  { %v322_v29 = vpop.f32.mrb[0].mxu1 }
 0x22d   :  { %v329_v30 = vadd.f32 %v359_v28, %v322_v29  ;;  %v434_v31 = vpop.f32.mrb[1].mxu1 }
 0x22e   :  { %v325_v32 = vpop.f32.mrb[2].mxu1 }
 0x22f   :  { %338 = vst [vmem:[#allocation12] sm:$0xff] %v329_v30  ;;  %v330_v33 = vadd.f32 %v359_v28, %v325_v32  ;;  %v435_v34 = vpop.f32.mrb[3].mxu1 }
 0x231   :  { %339 = vst [vmem:[#allocation12 + $0x8] sm:$0xff] %v330_v33 }
 0x232   :  { %586 = shalt.err (!%p583_p2)
}
 0x233   :  { %s587_s7 = scalar_lea.hbm %s740_s5, 256 }
 0x234   :  { %p588_p3 = scmp.ne.s32.totalorder %s740_s5, %s587_s7  ;;  %p591_p4 = scmp.lt.u32.totalorder %s587_s7, %s740_s5 }
 0x236   :  { %p593_p5 = pnand %p591_p4, %p588_p3 }
 0x238   :  { %596 = shalt.err (!%p593_p5)
}
 0x239   :  { %s615_s12 = smov 128   ;;  %s616_s13 = smov 8  }
 0x23a   :  { %351 = dma.vmem_to_hbm [thread:$0]  %s346_s28, 256, %s740_s5, [#allocation5], %s615_s12, %s615_s12, %s616_s13  }
 0x23b   :  { %603 = dma.done.wait [#allocation5], 256  }
 0x23c   :  { %604 = vsyncadd [#allocation5], 4294967040 }
 0x23d   :  { %355 = vsyncpa [#allocation4], 1 }
 0x23e   :  { %356 = vsyncpa [#allocation7], 1 }
 0x23f   :  { %357 = vsyncpa [#allocation10], 1 }
 0x240   :  { %358 = vsyncpa [#allocation5], 1 }

</bundles_post_ra>
